<compile_context>
chip_gen: v7x
topology: tpu7x:2x2x1
jax: 0.10.0
libtpu: 0.0.40
codegen_flags: <defaults>
</compile_context>

<pallas_src>
import functools

import jax
import jax.numpy as jnp
from jax.experimental import pallas as pl
from jax.experimental.pallas import tpu as pltpu


def _global_max_pool_kernel(x_ref, o_ref, *, length, block_len, fill_value):
    # x_ref: (block_rows, block_len) chunk of the flattened (N*C, L) input.
    # o_ref: (block_rows, 1) running max, resident across the L (arbitrary) axis.
    k = pl.program_id(1)

    @pl.when(k == 0)
    def _init():
        o_ref[...] = jnp.full(o_ref.shape, fill_value, o_ref.dtype)

    x = x_ref[...]
    if length % block_len != 0:
        # Last L-chunk is partial: mask out-of-bounds lanes so padding
        # (undefined data) cannot win the reduction.
        lane = jax.lax.broadcasted_iota(jnp.int32, x.shape, dimension=1)
        valid = (k * block_len + lane) < length
        x = jnp.where(valid, x, jnp.asarray(fill_value, x.dtype))

    o_ref[...] = jnp.maximum(o_ref[...], jnp.max(x, axis=-1, keepdims=True))


def global_max_pool1d(x, *, block_rows=256, block_len=2048):
    """x: (N, C, L) -> (N, C, 1), exact max over the last axis
    (== F.max_pool1d(x, kernel_size=L))."""
    n, c, l = x.shape
    nc = n * c
    x2 = x.reshape(nc, l)

    # Tile sizes: full dim if small, otherwise aligned tiles
    # (rows multiple of 8, length multiple of 128).
    br = block_rows if nc >= block_rows else nc
    bl = block_len if l >= block_len else l

    if jnp.issubdtype(x.dtype, jnp.floating):
        fill = float("-inf")
    else:
        fill = int(jnp.iinfo(x.dtype).min)

    grid = (pl.cdiv(nc, br), pl.cdiv(l, bl))

    itemsize = jnp.dtype(x.dtype).itemsize
    cost = pl.CostEstimate(
        flops=nc * l,
        transcendentals=0,
        bytes_accessed=nc * l * itemsize + nc * itemsize,
    )

    kernel = functools.partial(
        _global_max_pool_kernel, length=l, block_len=bl, fill_value=fill
    )

    out2 = pl.pallas_call(
        kernel,
        out_shape=jax.ShapeDtypeStruct((nc, 1), x.dtype),
        grid_spec=pltpu.PrefetchScalarGridSpec(
            num_scalar_prefetch=0,
            grid=grid,
            in_specs=[pl.BlockSpec((br, bl), lambda i, k: (i, k))],
            out_specs=pl.BlockSpec((br, 1), lambda i, k: (i, 0)),
        ),
        compiler_params=pltpu.CompilerParams(
            dimension_semantics=("parallel", "arbitrary"),
        ),
        cost_estimate=cost,
    )(x2)

    return out2.reshape(n, c, 1)


if __name__ == "__main__":
    key = jax.random.PRNGKey(0)

    # Small shape consistent with the module's 1-D pooling input (N, C, L).
    N, C, L = 2, 4, 16
    x = jax.random.normal(key, (N, C, L), dtype=jnp.float32)
    out = jax.block_until_ready(global_max_pool1d(x))
    ref = jnp.max(x, axis=2, keepdims=True)
    assert out.shape == (N, C, 1), out.shape
    assert jnp.allclose(out, ref), "mismatch vs reference (small case)"

    # Secondary check exercising the tiled path: multi row-tiles (with a
    # partial row tile) and multi L-chunks (with a masked partial tail).
    key2 = jax.random.PRNGKey(1)
    N2, C2, L2 = 2, 6, 2200
    x2 = jax.random.normal(key2, (N2, C2, L2), dtype=jnp.float32)
    out2 = jax.block_until_ready(
        global_max_pool1d(x2, block_rows=8, block_len=512)
    )
    ref2 = jnp.max(x2, axis=2, keepdims=True)
    assert out2.shape == (N2, C2, 1), out2.shape
    assert jnp.allclose(out2, ref2), "mismatch vs reference (tiled case)"

    print("KERNEL_OK")
</pallas_src>

<mosaic_0001>
module attributes {stable_mosaic.version = 11 : i64} {
  func.func @_global_max_pool_kernel(%arg0: i32, %arg1: i32, %arg2: memref<8x16xf32, #tpu.memory_space<vmem>>, %arg3: memref<8x1xf32, #tpu.memory_space<vmem>>) attributes {dimension_semantics = [#tpu.dimension_semantics<parallel>, #tpu.dimension_semantics<arbitrary>], iteration_bounds = array<i64: 1, 1>, scalar_prefetch = 0 : i64, scratch_operands = 0 : i64, tpu.core_type = #tpu.core_type<tc>, window_params = [{transform_indices = @transform_0, window_bounds = array<i64: 8, 16>}, {transform_indices = @transform_1, window_bounds = array<i64: 8, 1>}]} {
    %c0_i32 = arith.constant 0 : i32
    %0 = arith.cmpi eq, %arg1, %c0_i32 : i32
    %1 = arith.extui %0 : i1 to i32
    %c0_i32_0 = arith.constant 0 : i32
    %2 = arith.cmpi ne, %1, %c0_i32_0 : i32
    scf.if %2 {
      %cst_6 = arith.constant 0xFF800000 : f32
      %9 = vector.broadcast %cst_6 : f32 to vector<8x1xf32>
      %c0_7 = arith.constant 0 : index
      %c0_8 = arith.constant 0 : index
      %10 = vector.load %arg3[%c0_7, %c0_8] : memref<8x1xf32, #tpu.memory_space<vmem>>, vector<8x1xf32>
      tpu.vector_store %arg3[%c0_7, %c0_8], %9 {strides = array<i32>} : memref<8x1xf32, #tpu.memory_space<vmem>>, vector<8x1xf32>,
    } else {
    }
    %c0 = arith.constant 0 : index
    %c0_1 = arith.constant 0 : index
    %3 = vector.load %arg2[%c0, %c0_1] : memref<8x16xf32, #tpu.memory_space<vmem>>, vector<8x16xf32>
    %c0_2 = arith.constant 0 : index
    %c0_3 = arith.constant 0 : index
    %4 = vector.load %arg3[%c0_2, %c0_3] : memref<8x1xf32, #tpu.memory_space<vmem>>, vector<8x1xf32>
    %cst = arith.constant dense<0xFF800000> : vector<8xf32>
    %5 = vector.multi_reduction <maximumf>, %3, %cst [1] : vector<8x16xf32> to vector<8xf32>
    %6 = vector.shape_cast %5 : vector<8xf32> to vector<8x1xf32>
    %7 = arith.maximumf %4, %6 : vector<8x1xf32>
    %c0_4 = arith.constant 0 : index
    %c0_5 = arith.constant 0 : index
    %8 = vector.load %arg3[%c0_4, %c0_5] : memref<8x1xf32, #tpu.memory_space<vmem>>, vector<8x1xf32>
    tpu.vector_store %arg3[%c0_4, %c0_5], %7 {strides = array<i32>} : memref<8x1xf32, #tpu.memory_space<vmem>>, vector<8x1xf32>,
    return
  }
  func.func @transform_0(%arg0: i32, %arg1: i32) -> (i32, i32) {
    %c0_i32 = arith.constant 0 : i32
    return %arg0, %arg1 : i32, i32
  }
  func.func @transform_1(%arg0: i32, %arg1: i32) -> (i32, i32) {
    %c0_i32 = arith.constant 0 : i32
    %c0_i32_0 = arith.constant 0 : i32
    return %arg0, %c0_i32 : i32, i32
  }
}

</mosaic_0001>

<bundles_post_ra>
// kernel: tpu_custom_call.1
= control target key start
LH: loop header
LB: loop body
LE: loop exit
PB: predicated region body
PF: predicated region fallthrough
CT: control target
= control target key end

     0   :  { %6 = vsyncpa [#allocation3], 0  ;;  %s66_s6 = smov [#allocation2]   ;;  %s99_s0 = inlined_call_operand.hbm [shape: f32[8,16], index: 0, kind: input, shape index: {}]   ;;  %s100_s1 = inlined_call_operand.vmem [shape: f32[8,1], index: 1, kind: output, shape index: {}]  }
   0x1   :  { %s13_s7 = sshll.u32 %s66_s6, 4  ;;  %s42_s10 = scalar_lea.hbm %s99_s0, 128  ;;  %s14_s7 = int_to_ptr.vmem [resolvable:$true] %s13_s7 }
   0x2   :  { %p43_p0 = scmp.ne.s32.totalorder %s99_s0, %s42_s10  ;;  %p46_p1 = scmp.lt.u32.totalorder %s42_s10, %s99_s0 }
   0x4   :  { %p48_p2 = pnand %p46_p1, %p43_p0 }
   0x6   :  { %51 = shalt.err (!%p48_p2)
}
   0x7   :  { %s52_s15 = scalar_lea.vmem %s14_s7, 128  ;;  %p57_p4 = scmp.lt.s32.totalorder %s14_s7, %s14_s7 }
   0x8   :  { %p53_p3 = scmp.ne.s32.totalorder %s14_s7, %s52_s15  ;;  %p58_p5 = scmp.lt.s32.totalorder %s52_s15, %s52_s15 }
   0xa   :  { %p59_p6 = por %p58_p5, %p57_p4 }
   0xc   :  { %p60_p7 = pnand %p59_p6, %p53_p3 }
   0xe   :  { %63 = shalt.err (!%p60_p7)
}
   0xf   :  { %16 = dma.hbm_to_vmem [thread:$0]  %s99_s0, 128, %s14_s7, [#allocation3]  }
  0x10   :  { %64 = dma.done.wait [#allocation3], 128  }
  0x11   :  { %65 = vsyncadd [#allocation3], 4294967168  ;;  %vm24_vm0 = vcmask 7168   ;;  %v67_v0 = vmov -inf   ;;  %vm28_vm1 = vcmask 130048   ;;  %v26_v1 = vld [vmem:[#allocation2] sm:$0xff] }
  0x12   :  { %25 = vst.msk [vmem:[%s100_s1] sm:$0xff] %vm24_vm0, %v67_v0  ;;  %v29_v2 = vsel %vm28_vm1, %v26_v1, -inf }
  0x13   :  { %30 = vmax.xlane.f32.xlu0 %v29_v2 }
  0x19   :  { %v27_v3 = vld [vmem:[%s100_s1] sm:$0xff] }
  0xa0   :  { %v31_v4 = vpop.xlane.xlu0 %30 }
  0xa1   :  { %v32_v5 = vmax.f32 %v27_v3, %v31_v4 }
  0xa3   :  { %34 = vst.msk [vmem:[%s100_s1] sm:$0xff] %vm24_vm0, %v32_v5 }
  0xa4   :  { %39 = vsyncpa [#allocation3], 1 }

</bundles_post_ra>
